<compile_context>
chip_gen: v6e
topology: v6e:2x2x1
jax: 0.10.0
libtpu: 0.0.40
codegen_flags: <defaults>
</compile_context>

<pallas_src>
import jax
import jax.numpy as jnp
from jax.experimental import pallas as pl
from jax.experimental.pallas import tpu as pltpu


def _add_kernel(a_ref, b_ref, o_ref):
    # Elementwise add of the current VMEM tile (pure VPU work, memory-bound).
    o_ref[...] = a_ref[...] + b_ref[...]


def _min_sublane(dtype):
    # Minimum sublane tile: 8 for 4-byte, 16 for 2-byte, 32 for 1-byte dtypes.
    itemsize = jnp.dtype(dtype).itemsize
    return 8 * max(1, 4 // max(itemsize, 1))


def _pick_cols(n, max_cols):
    # Widest multiple of 128 (<= max_cols) that exactly divides n; 0 if none.
    start = min(max_cols, n)
    start -= start % 128
    for c in range(start, 127, -128):
        if n % c == 0:
            return c
    return 0


def subtractor_forward(in0, in1, *, max_cols=4096, target_tile_bytes=4 << 20):
    """Pallas TPU implementation of subtractor.forward: out = in0 + in1."""
    # Match torch broadcasting / type-promotion semantics up front (rare path).
    if in0.shape != in1.shape:
        in0, in1 = jnp.broadcast_arrays(in0, in1)
    if in0.dtype != in1.dtype:
        dt = jnp.result_type(in0.dtype, in1.dtype)
        in0, in1 = in0.astype(dt), in1.astype(dt)

    orig_shape = in0.shape
    dtype = in0.dtype
    n = in0.size
    if n == 0:
        return in0 + in1

    itemsize = jnp.dtype(dtype).itemsize
    a = in0.reshape(-1)
    b = in1.reshape(-1)

    # Lane-dense layout: widest last dim (multiple of 128) dividing n exactly.
    cols = _pick_cols(n, max_cols)
    padded = 0
    if cols == 0:
        # Element count not divisible by 128: minimal flat pad (single cheap
        # copy), tail sliced off after the kernel.
        n_pad = -(-n // 128) * 128
        padded = n_pad - n
        a = jnp.pad(a, (0, padded))
        b = jnp.pad(b, (0, padded))
        n = n_pad
        cols = _pick_cols(n, max_cols)

    rows = n // cols
    a2 = a.reshape(rows, cols)
    b2 = b.reshape(rows, cols)

    # Row-tile sizing: biggest tile under the per-buffer VMEM budget, rounded
    # to the sublane multiple; prefer an exact divisor of `rows` so every grid
    # step writes a full (unmasked) block.
    sub = _min_sublane(dtype)
    budget_rows = max(sub, (target_tile_bytes // (cols * itemsize)) // sub * sub)
    if rows <= budget_rows:
        tile_r = rows  # single block along rows (full-dim block: always legal)
    else:
        tile_r = 0
        for cand in range(budget_rows, sub - 1, -sub):
            if rows % cand == 0:
                tile_r = cand
                break
        if tile_r == 0:
            # No nice divisor: rely on Pallas edge handling for the last block.
            tile_r = budget_rows

    grid = (pl.cdiv(rows, tile_r),)
    out2 = pl.pallas_call(
        _add_kernel,
        out_shape=jax.ShapeDtypeStruct((rows, cols), dtype),
        grid_spec=pltpu.PrefetchScalarGridSpec(
            num_scalar_prefetch=0,
            grid=grid,
            in_specs=[
                pl.BlockSpec((tile_r, cols), lambda i: (i, 0)),
                pl.BlockSpec((tile_r, cols), lambda i: (i, 0)),
            ],
            out_specs=pl.BlockSpec((tile_r, cols), lambda i: (i, 0)),
        ),
        compiler_params=pltpu.CompilerParams(
            # Row blocks are independent: megacore (v7x 2-TC) may split the grid.
            dimension_semantics=("parallel",),
            # 3 arrays x 2 pipeline buffers x <=4 MiB tile = <=24 MiB + headroom.
            vmem_limit_bytes=40 << 20,
        ),
    )(a2, b2)

    out = out2.reshape(-1)
    if padded:
        out = out[: out.size - padded]
    return out.reshape(orig_shape)


if __name__ == "__main__":
    key = jax.random.PRNGKey(0)
    k0, k1, k2, k3 = jax.random.split(key, 4)
    fwd = jax.jit(subtractor_forward)

    # Small shape consistent with the module (width=16 elementwise adder).
    in0 = jax.random.normal(k0, (2, 4, 16, 16), dtype=jnp.float32)
    in1 = jax.random.normal(k1, (2, 4, 16, 16), dtype=jnp.float32)
    out = jax.block_until_ready(fwd(in0, in1))
    ref = in0 + in1
    assert out.shape == ref.shape and out.dtype == ref.dtype
    assert jnp.allclose(out, ref), "mismatch vs reference elementwise add (small)"

    # Larger input exercising the multi-step tiled path (wide-lane layout).
    x_big = jax.random.normal(k2, (1024, 1152), dtype=jnp.float32)
    y_big = jax.random.normal(k3, (1024, 1152), dtype=jnp.float32)
    out_big = jax.block_until_ready(fwd(x_big, y_big))
    assert jnp.allclose(out_big, x_big + y_big), "mismatch vs reference (tiled)"

    # Misaligned element count exercising the pad fallback path.
    x_m = jax.random.normal(k2, (7, 33), dtype=jnp.float32)
    y_m = jax.random.normal(k3, (7, 33), dtype=jnp.float32)
    out_m = jax.block_until_ready(fwd(x_m, y_m))
    assert jnp.allclose(out_m, x_m + y_m), "mismatch vs reference (padded tail)"

    print("KERNEL_OK")
</pallas_src>

<mosaic_0001>
module attributes {stable_mosaic.version = 11 : i64} {
  func.func @_add_kernel(%arg0: i32, %arg1: memref<1x2048xf32, #tpu.memory_space<vmem>>, %arg2: memref<1x2048xf32, #tpu.memory_space<vmem>>, %arg3: memref<1x2048xf32, #tpu.memory_space<vmem>>) attributes {dimension_semantics = [#tpu.dimension_semantics<parallel>], iteration_bounds = array<i64: 1>, scalar_prefetch = 0 : i64, scratch_operands = 0 : i64, tpu.core_type = #tpu.core_type<tc>, window_params = [{transform_indices = @transform_0, window_bounds = array<i64: 1, 2048>}, {transform_indices = @transform_1, window_bounds = array<i64: 1, 2048>}, {transform_indices = @transform_2, window_bounds = array<i64: 1, 2048>}]} {
    %c0 = arith.constant 0 : index
    %c0_0 = arith.constant 0 : index
    %0 = vector.load %arg1[%c0, %c0_0] : memref<1x2048xf32, #tpu.memory_space<vmem>>, vector<1x2048xf32>
    %c0_1 = arith.constant 0 : index
    %c0_2 = arith.constant 0 : index
    %1 = vector.load %arg2[%c0_1, %c0_2] : memref<1x2048xf32, #tpu.memory_space<vmem>>, vector<1x2048xf32>
    %2 = arith.addf %0, %1 : vector<1x2048xf32>
    %c0_3 = arith.constant 0 : index
    %c0_4 = arith.constant 0 : index
    %3 = vector.load %arg3[%c0_3, %c0_4] : memref<1x2048xf32, #tpu.memory_space<vmem>>, vector<1x2048xf32>
    tpu.vector_store %arg3[%c0_3, %c0_4], %2 {strides = array<i32>} : memref<1x2048xf32, #tpu.memory_space<vmem>>, vector<1x2048xf32>,
    return
  }
  func.func @transform_0(%arg0: i32) -> (i32, i32) {
    %c0_i32 = arith.constant 0 : i32
    %c0_i32_0 = arith.constant 0 : i32
    return %arg0, %c0_i32 : i32, i32
  }
  func.func @transform_1(%arg0: i32) -> (i32, i32) {
    %c0_i32 = arith.constant 0 : i32
    %c0_i32_0 = arith.constant 0 : i32
    return %arg0, %c0_i32 : i32, i32
  }
  func.func @transform_2(%arg0: i32) -> (i32, i32) {
    %c0_i32 = arith.constant 0 : i32
    %c0_i32_0 = arith.constant 0 : i32
    return %arg0, %c0_i32 : i32, i32
  }
}

</mosaic_0001>

<bundles_post_ra>
// kernel: subtractor_forward.1
= control target key start
LH: loop header
LB: loop body
LE: loop exit
PB: predicated region body
PF: predicated region fallthrough
CT: control target
= control target key end

     0   :  { %s56_s0 = inlined_call_operand.vmem [shape: f32[1,2048], index: 0, kind: input, shape index: {}]   ;;  %s57_s1 = inlined_call_operand.vmem [shape: f32[1,2048], index: 1, kind: input, shape index: {}]   ;;  %s58_s2 = inlined_call_operand.vmem [shape: f32[1,2048], index: 2, kind: output, shape index: {}]  }
   0x1   :  { %v11_v0 = vld [vmem:[%s56_s0] sm:$0xff]  ;;  %v12_v2 = vld [vmem:[%s56_s0 + $0x8] sm:$0xff] }
   0x2   :  { %v13_v1 = vld [vmem:[%s57_s1] sm:$0xff]  ;;  %v14_v4 = vld [vmem:[%s57_s1 + $0x8] sm:$0xff] }
   0x3   :  { %v15_v3 = vadd.f32 %v13_v1, %v11_v0  ;;  %v16_v5 = vadd.f32 %v14_v4, %v12_v2 }
   0x5   :  { %17 = vst [vmem:[%s58_s2] sm:$0xff] %v15_v3  ;;  %18 = vst [vmem:[%s58_s2 + $0x8] sm:$0xff] %v16_v5 }

</bundles_post_ra>
